<compile_context>
chip_gen: v5e
topology: v5e:2x2
jax: 0.10.0
libtpu: 0.0.40
codegen_flags: <defaults>
</compile_context>

<pallas_src>
import numpy as np
import jax
import jax.numpy as jnp
from jax.experimental import pallas as pl
from jax.experimental.pallas import tpu as pltpu

POOL_SUM = 0
POOL_MEAN = 1


def _make_kernel():
    """Grid = (T+1, KT).  j==0: copy dense; j>0: accumulate S@W over K tiles."""

    def kernel(ktoff_ref, nkt_ref, dense_ref, s_ref, w_ref, out_ref, acc_ref):
        j = pl.program_id(0)          # output column block: 0 = dense, j>0 = table j-1
        k = pl.program_id(1)          # K-tile index within this table
        last_k = pl.num_programs(1) - 1

        # Dense passthrough into column block 0 (written once per j==0 block).
        @pl.when(jnp.logical_and(j == 0, k == last_k))
        def _():
            out_ref[...] = dense_ref[...].astype(out_ref.dtype)

        # EmbeddingBag pooling for table j-1 as an MXU matmul over K tiles.
        @pl.when(j > 0)
        def _():
            @pl.when(k == 0)
            def _():
                acc_ref[...] = jnp.zeros_like(acc_ref)

            # Only accumulate tiles that actually belong to this table.
            @pl.when(k < nkt_ref[j])
            def _():
                acc_ref[...] += jnp.dot(
                    s_ref[...], w_ref[...],
                    preferred_element_type=jnp.float32)

            @pl.when(k == last_k)
            def _():
                out_ref[...] = acc_ref[...].astype(out_ref.dtype)

    return kernel


def merged_embeddingbag_with_cat(weights_list, indices_list, offsets_list,
                                 dense_feature, pooling_mode=POOL_SUM,
                                 nk_block=128):
    """Forward pass of MergedEmbeddingBagWithCat.

    weights_list : list of (num_embeddings_t, D) arrays
    indices_list : list of 1-D int arrays (EmbeddingBag indices per table)
    offsets_list : list of 1-D int arrays (EmbeddingBag offsets; length B or
                   B+1 when include_last_offset=True)
    dense_feature: (B, D) array
    returns      : (B, (n_tables + 1) * D) array
    """
    T = len(weights_list)
    dense = jnp.asarray(dense_feature)
    B, D = dense.shape
    assert all(np.asarray(w).shape[1] == D for w in weights_list), \
        "all tables must share embedding_dim == dense feature width"

    # ---- host glue: build per-table bag-assignment matrices S_t and pad ----
    # each table only to the K-tile multiple (no global max-N padding).
    s_blocks, w_blocks, nkt_per_table = [], [], []
    for t in range(T):
        w_np = np.asarray(weights_list[t]).astype(np.float32)
        n_t = w_np.shape[0]
        ind = np.asarray(indices_list[t]).astype(np.int64)
        off = np.asarray(offsets_list[t]).astype(np.int64)

        s_t = np.zeros((B, n_t), np.float32)
        for b in range(B):
            start = int(off[b])
            end = int(off[b + 1]) if (b + 1) < len(off) else len(ind)
            if end > start:
                np.add.at(s_t[b], ind[start:end], 1.0)
                if pooling_mode == POOL_MEAN:
                    s_t[b] /= float(end - start)
            # empty bag -> all-zero row -> pooled output 0 (matches EmbeddingBag)

        n_pad = int(np.ceil(n_t / nk_block) * nk_block)
        s_pad = np.zeros((B, n_pad), np.float32)
        s_pad[:, :n_t] = s_t
        w_pad = np.zeros((n_pad, D), np.float32)
        w_pad[:n_t, :] = w_np

        s_blocks.append(s_pad)
        w_blocks.append(w_pad)
        nkt_per_table.append(n_pad // nk_block)

    s_cat = jnp.asarray(np.concatenate(s_blocks, axis=1))   # (B, Ntot_pad)
    w_cat = jnp.asarray(np.concatenate(w_blocks, axis=0))   # (Ntot_pad, D)

    # Per-output-block (dense + T tables) K-tile offsets & counts (SMEM prefetch).
    ktile_off = np.zeros(T + 1, np.int32)
    nkt = np.ones(T + 1, np.int32)          # j==0 (dense): 1 harmless tile
    acc = 0
    for t in range(T):
        ktile_off[t + 1] = acc
        nkt[t + 1] = nkt_per_table[t]
        acc += nkt_per_table[t]
    KT = int(max(nkt_per_table))            # grid extent along the K axis

    kernel = _make_kernel()

    def _ktile(j, k, ko, nk):
        # clamp to this table's last valid tile; extra steps are skipped in-kernel
        return ko[j] + jnp.minimum(k, nk[j] - 1)

    out = pl.pallas_call(
        kernel,
        out_shape=jax.ShapeDtypeStruct((B, (T + 1) * D), dense.dtype),
        grid_spec=pltpu.PrefetchScalarGridSpec(
            num_scalar_prefetch=2,                  # ktile_off, nkt -> SMEM
            grid=(T + 1, KT),
            in_specs=[
                # dense feature: constant block index -> DMA'd once, reused
                pl.BlockSpec((B, D), lambda j, k, ko, nk: (0, 0)),
                # S tile for this (table, k): (B, NK)
                pl.BlockSpec((B, nk_block),
                             lambda j, k, ko, nk: (0, _ktile(j, k, ko, nk))),
                # weight tile for this (table, k): (NK, D)
                pl.BlockSpec((nk_block, D),
                             lambda j, k, ko, nk: (_ktile(j, k, ko, nk), 0)),
            ],
            # output column block j of the concatenated result
            out_specs=pl.BlockSpec((B, D), lambda j, k, ko, nk: (0, j)),
            scratch_shapes=[pltpu.VMEM((B, D), jnp.float32)],
        ),
        compiler_params=pltpu.CompilerParams(
            # axis 0: independent output column blocks -> shard across TCs (v7x)
            # axis 1: K reduction with resident accumulator -> arbitrary
            dimension_semantics=("parallel", "arbitrary")),
    )(jnp.asarray(ktile_off), jnp.asarray(nkt), dense, s_cat, w_cat)
    return out


def _ref_forward(weights_list, indices_list, offsets_list, dense, pooling_mode):
    """Pure-numpy reference matching nn.EmbeddingBag semantics + cat."""
    B = dense.shape[0]
    outs = [np.asarray(dense, np.float32)]
    for t, w in enumerate(weights_list):
        w = np.asarray(w, np.float32)
        ind = np.asarray(indices_list[t])
        off = np.asarray(offsets_list[t])
        res = np.zeros((B, w.shape[1]), np.float32)
        for b in range(B):
            start = int(off[b])
            end = int(off[b + 1]) if (b + 1) < len(off) else len(ind)
            if end > start:
                rows = w[ind[start:end]]
                res[b] = rows.sum(0) if pooling_mode == POOL_SUM else rows.mean(0)
        outs.append(res)
    return np.concatenate(outs, axis=1)


if __name__ == "__main__":
    # Small deterministic synthetic setup (equivalent to an EmbeddingSpec list):
    # 3 tables, embedding_dim D=128, sum pooling, include_last_offset=False.
    # Table 0 is made larger (300 rows) so it spans multiple K tiles and
    # exercises the variable-K-tile / clamp-and-skip path.
    key = jax.random.PRNGKey(0)
    T = 3
    D = 128
    B = 8
    num_embeddings = [300, 20, 40]

    keys = jax.random.split(key, T + 1)

    weights_list = []
    for t in range(T):
        w = jax.random.normal(keys[t], (num_embeddings[t], D),
                              dtype=jnp.float32) * 0.05
        weights_list.append(w)

    dense_feature = jax.random.normal(keys[T], (B, D), dtype=jnp.float32)

    # Ragged EmbeddingBag inputs (bag lengths in [1, 4]).
    indices_list, offsets_list = [], []
    rng = np.random.RandomState(0)
    for t in range(T):
        bag_lens = rng.randint(1, 5, size=B)
        offsets = np.zeros(B, np.int32)          # include_last_offset = False
        offsets[1:] = np.cumsum(bag_lens)[:-1]
        total = int(bag_lens.sum())
        indices = rng.randint(0, num_embeddings[t], size=total).astype(np.int32)
        indices_list.append(jnp.asarray(indices))
        offsets_list.append(jnp.asarray(offsets))

    out = merged_embeddingbag_with_cat(weights_list, indices_list, offsets_list,
                                       dense_feature, pooling_mode=POOL_SUM)
    out = jax.block_until_ready(out)

    ref = _ref_forward(weights_list, indices_list, offsets_list,
                       np.asarray(dense_feature), POOL_SUM)

    assert out.shape == (B, (T + 1) * D), out.shape
    np.testing.assert_allclose(np.asarray(out), ref, rtol=2e-2, atol=2e-3)

    print("KERNEL_OK")
</pallas_src>

<mosaic_0001>
module attributes {stable_mosaic.version = 11 : i64} {
  func.func @kernel(%arg0: i32, %arg1: i32, %arg2: memref<4xi32, #tpu.memory_space<smem>>, %arg3: memref<4xi32, #tpu.memory_space<smem>>, %arg4: memref<8x128xf32, #tpu.memory_space<vmem>>, %arg5: memref<8x128xf32, #tpu.memory_space<vmem>>, %arg6: memref<128x128xf32, #tpu.memory_space<vmem>>, %arg7: memref<8x128xf32, #tpu.memory_space<vmem>>, %arg8: memref<8x128xf32, #tpu.memory_space<vmem>>) attributes {dimension_semantics = [#tpu.dimension_semantics<parallel>, #tpu.dimension_semantics<arbitrary>], iteration_bounds = array<i64: 4, 3>, scalar_prefetch = 2 : i64, scratch_operands = 1 : i64, tpu.core_type = #tpu.core_type<tc>, window_params = [{pipeline_mode = #tpu.pipeline_mode<synchronous>, transform_indices = @transform_0, window_bounds = array<i64: 8, 128>}, {transform_indices = @transform_1, window_bounds = array<i64: 8, 128>}, {transform_indices = @transform_2, window_bounds = array<i64: 128, 128>}, {transform_indices = @transform_3, window_bounds = array<i64: 8, 128>}]} {
    %c0_i32 = arith.constant 0 : i32
    %0 = arith.cmpi eq, %arg0, %c0_i32 : i32
    %c2_i32 = arith.constant 2 : i32
    %1 = arith.cmpi eq, %arg1, %c2_i32 : i32
    %2 = arith.andi %0, %1 : i1
    %3 = arith.extui %2 : i1 to i32
    %c0_i32_0 = arith.constant 0 : i32
    %4 = arith.cmpi ne, %3, %c0_i32_0 : i32
    scf.if %4 {
      %c0 = arith.constant 0 : index
      %c0_3 = arith.constant 0 : index
      %8 = vector.load %arg4[%c0, %c0_3] : memref<8x128xf32, #tpu.memory_space<vmem>>, vector<8x128xf32>
      %c0_4 = arith.constant 0 : index
      %c0_5 = arith.constant 0 : index
      %9 = vector.load %arg7[%c0_4, %c0_5] : memref<8x128xf32, #tpu.memory_space<vmem>>, vector<8x128xf32>
      tpu.vector_store %arg7[%c0_4, %c0_5], %8 {strides = array<i32>} : memref<8x128xf32, #tpu.memory_space<vmem>>, vector<8x128xf32>,
    } else {
    }
    %c0_i32_1 = arith.constant 0 : i32
    %5 = arith.cmpi sgt, %arg0, %c0_i32_1 : i32
    %6 = arith.extui %5 : i1 to i32
    %c0_i32_2 = arith.constant 0 : i32
    %7 = arith.cmpi ne, %6, %c0_i32_2 : i32
    scf.if %7 {
      %c0_i32_3 = arith.constant 0 : i32
      %8 = arith.cmpi eq, %arg1, %c0_i32_3 : i32
      %9 = arith.extui %8 : i1 to i32
      %c0_i32_4 = arith.constant 0 : i32
      %10 = arith.cmpi ne, %9, %c0_i32_4 : i32
      scf.if %10 {
        %cst = arith.constant 0.000000e+00 : f32
        %19 = vector.broadcast %cst : f32 to vector<8x128xf32>
        %c0 = arith.constant 0 : index
        %c0_8 = arith.constant 0 : index
        %20 = vector.load %arg8[%c0, %c0_8] : memref<8x128xf32, #tpu.memory_space<vmem>>, vector<8x128xf32>
        tpu.vector_store %arg8[%c0, %c0_8], %19 {strides = array<i32>} : memref<8x128xf32, #tpu.memory_space<vmem>>, vector<8x128xf32>,
      } else {
      }
      %11 = arith.index_cast %arg0 : i32 to index
      %12 = memref.load %arg3[%11] : memref<4xi32, #tpu.memory_space<smem>>
      %13 = arith.cmpi slt, %arg1, %12 : i32
      %14 = arith.extui %13 : i1 to i32
      %c0_i32_5 = arith.constant 0 : i32
      %15 = arith.cmpi ne, %14, %c0_i32_5 : i32
      scf.if %15 {
        %c0 = arith.constant 0 : index
        %c0_8 = arith.constant 0 : index
        %19 = vector.load %arg8[%c0, %c0_8] : memref<8x128xf32, #tpu.memory_space<vmem>>, vector<8x128xf32>
        %c0_9 = arith.constant 0 : index
        %c0_10 = arith.constant 0 : index
        %20 = vector.load %arg5[%c0_9, %c0_10] : memref<8x128xf32, #tpu.memory_space<vmem>>, vector<8x128xf32>
        %c0_11 = arith.constant 0 : index
        %c0_12 = arith.constant 0 : index
        %21 = vector.load %arg6[%c0_11, %c0_12] : memref<128x128xf32, #tpu.memory_space<vmem>>, vector<128x128xf32>
        %cst = arith.constant dense<0.000000e+00> : vector<8x128xf32>
        %22 = tpu.matmul %20, %21, %cst {dimension_numbers = #tpu.dot_dimension_numbers<[1], [0], [0], [1], [0, 0, 1, 1], [], []>} : vector<8x128xf32>, vector<128x128xf32>, vector<8x128xf32> -> vector<8x128xf32>
        %23 = arith.addf %19, %22 : vector<8x128xf32>
        %c0_13 = arith.constant 0 : index
        %c0_14 = arith.constant 0 : index
        %24 = vector.load %arg8[%c0_13, %c0_14] : memref<8x128xf32, #tpu.memory_space<vmem>>, vector<8x128xf32>
        tpu.vector_store %arg8[%c0_13, %c0_14], %23 {strides = array<i32>} : memref<8x128xf32, #tpu.memory_space<vmem>>, vector<8x128xf32>,
      } else {
      }
      %c2_i32_6 = arith.constant 2 : i32
      %16 = arith.cmpi eq, %arg1, %c2_i32_6 : i32
      %17 = arith.extui %16 : i1 to i32
      %c0_i32_7 = arith.constant 0 : i32
      %18 = arith.cmpi ne, %17, %c0_i32_7 : i32
      scf.if %18 {
        %c0 = arith.constant 0 : index
        %c0_8 = arith.constant 0 : index
        %19 = vector.load %arg8[%c0, %c0_8] : memref<8x128xf32, #tpu.memory_space<vmem>>, vector<8x128xf32>
        %c0_9 = arith.constant 0 : index
        %c0_10 = arith.constant 0 : index
        %20 = vector.load %arg7[%c0_9, %c0_10] : memref<8x128xf32, #tpu.memory_space<vmem>>, vector<8x128xf32>
        tpu.vector_store %arg7[%c0_9, %c0_10], %19 {strides = array<i32>} : memref<8x128xf32, #tpu.memory_space<vmem>>, vector<8x128xf32>,
      } else {
      }
    } else {
    }
    return
  }
  func.func @transform_0(%arg0: i32, %arg1: i32, %arg2: memref<4xi32, #tpu.memory_space<smem>>, %arg3: memref<4xi32, #tpu.memory_space<smem>>) -> (i32, i32) {
    %c0_i32 = arith.constant 0 : i32
    %c0_i32_0 = arith.constant 0 : i32
    %c0_i32_1 = arith.constant 0 : i32
    return %c0_i32, %c0_i32_0 : i32, i32
  }
  func.func @transform_1(%arg0: i32, %arg1: i32, %arg2: memref<4xi32, #tpu.memory_space<smem>>, %arg3: memref<4xi32, #tpu.memory_space<smem>>) -> (i32, i32) {
    %0 = arith.index_cast %arg0 : i32 to index
    %1 = memref.load %arg2[%0] : memref<4xi32, #tpu.memory_space<smem>>
    %2 = arith.index_cast %arg0 : i32 to index
    %3 = memref.load %arg3[%2] : memref<4xi32, #tpu.memory_space<smem>>
    %c1_i32 = arith.constant 1 : i32
    %4 = arith.subi %3, %c1_i32 : i32
    %5 = arith.minsi %arg1, %4 : i32
    %6 = arith.addi %1, %5 : i32
    %c0_i32 = arith.constant 0 : i32
    %c0_i32_0 = arith.constant 0 : i32
    return %c0_i32, %6 : i32, i32
  }
  func.func @transform_2(%arg0: i32, %arg1: i32, %arg2: memref<4xi32, #tpu.memory_space<smem>>, %arg3: memref<4xi32, #tpu.memory_space<smem>>) -> (i32, i32) {
    %0 = arith.index_cast %arg0 : i32 to index
    %1 = memref.load %arg2[%0] : memref<4xi32, #tpu.memory_space<smem>>
    %2 = arith.index_cast %arg0 : i32 to index
    %3 = memref.load %arg3[%2] : memref<4xi32, #tpu.memory_space<smem>>
    %c1_i32 = arith.constant 1 : i32
    %4 = arith.subi %3, %c1_i32 : i32
    %5 = arith.minsi %arg1, %4 : i32
    %6 = arith.addi %1, %5 : i32
    %c0_i32 = arith.constant 0 : i32
    %c0_i32_0 = arith.constant 0 : i32
    return %6, %c0_i32 : i32, i32
  }
  func.func @transform_3(%arg0: i32, %arg1: i32, %arg2: memref<4xi32, #tpu.memory_space<smem>>, %arg3: memref<4xi32, #tpu.memory_space<smem>>) -> (i32, i32) {
    %c0_i32 = arith.constant 0 : i32
    %c0_i32_0 = arith.constant 0 : i32
    return %c0_i32, %arg0 : i32, i32
  }
}

</mosaic_0001>

<bundles_post_ra>
// kernel: tpu_custom_call.1
= control target key start
LH: loop header
LB: loop body
LE: loop exit
PB: predicated region body
PF: predicated region fallthrough
CT: control target
= control target key end

     0   :  { %s981_s24 = smov [#allocation4]   ;;  %s982_s25 = smov [#allocation5]   ;;  %s1429_s0 = inlined_call_operand.hbm [shape: s32[4], index: 0, kind: input, shape index: {}]   ;;  %s1430_s2 = inlined_call_operand.hbm [shape: f32[8,128], index: 2, kind: input, shape index: {}]   ;;  %s1431_s3 = inlined_call_operand.hbm [shape: f32[8,640], index: 3, kind: input, shape index: {}]   ;;  %s1432_s4 = inlined_call_operand.hbm [shape: f32[640,128], index: 4, kind: input, shape index: {}]   ;;  %s1433_s5 = inlined_call_operand.hbm [shape: f32[8,512], index: 5, kind: output, shape index: {}]   ;;  %s1434_s1 = inlined_call_operand.hbm [shape: s32[4], index: 1, kind: input, shape index: {}]  }
   0x1   :  { %1450 = sst [smem:[#allocation40_spill]] %s1430_s2  ;;  %s11_s20 = sshll.u32 %s1429_s0, 4  ;;  %s12_s20 = int_to_ptr.hbm [resolvable:$true] %s11_s20 }
   0x2   :  { %1451 = sst [smem:[#allocation41_spill]] %s1431_s3  ;;  %s16_s23 = sshll.u32 %s1434_s1, 4  ;;  %s17_s23 = int_to_ptr.hbm [resolvable:$true] %s16_s23 }
   0x3   :  { %1452 = sst [smem:[#allocation42_spill]] %s1433_s5 }
   0x4   :  { %14 = dma.hbm_to_smem %s12_s20, 16, %s981_s24, [#allocation3] }
   0x5   :  { %19 = dma.hbm_to_smem %s17_s23, 16, %s982_s25, [#allocation3] }
   0x6   :  { %907 = dma.done.wait [#allocation3], 32 }
   0x7   :  { %908 = vsyncadd [#allocation3], 4294967264 }
   0x8   :  { %22 = sfence }
   0x9   :  { %23 = vsyncpa [#allocation7], 0 }
   0xa   :  { %24 = vsyncpa [#allocation10], 0 }
   0xb   :  { %26 = vsyncpa [#allocation10 + $0x1], 0 }
   0xc   :  { %27 = vsyncpa [#allocation8], 0 }
   0xd   :  { %29 = vsyncpa [#allocation8 + $0x1], 0  ;;  %s1023_s26 = smov 0   ;;  %s1025_s0 = smov 0  }
   0xe   :  { %s1027_s27 = smov 0   ;;  %s1029_s1 = smov 0  }
   0xf   :  { %s1031_s28 = smov 0   ;;  %s1033_s29 = smov 0  }
  0x10   :  { %s1035_s30 = smov 0   ;;  %s1037_s6 = smov 0  }
  0x11   :  { %s1039_s7 = smov 0   ;;  %s1041_s8 = smov 0  }
  0x12   :  { %s1043_s9 = smov 0   ;;  %s1045_s10 = smov 0  }
  0x13   :  { %s1047_s11 = smov 0   ;;  %s1049_s12 = smov 0  }
  0x14 LB: > { %1453 = sst [smem:[#allocation26_spill]] %s935_s27  ;;  %s44_s13 = sadd.s32 1, %s971_s10  ;;  %s979_s12 = sphi %s1049_s12, %s35_s12   ;;  %s975_s11 = sphi %s1047_s11, %s1515_s11   ;;  %s971_s10 = sphi %s1045_s10, %s1523_s10   ;;  %s967_s9 = sphi %s1043_s9, %s1513_s9   ;;  %s963_s8 = sphi %s1041_s8, %s1522_s8   ;;  %s959_s7 = sphi %s1039_s7, %s1512_s7   ;;  %s955_s6 = sphi %s1037_s6, %s1521_s6   ;;  %s951_s30 = sphi %s1035_s30, %s1520_s30   ;;  %s947_s29 = sphi %s1033_s29, %s1510_s29   ;;  %s943_s28 = sphi %s1031_s28, %s1519_s28   ;;  %s939_s1 = sphi %s1029_s1, %s1518_s1   ;;  %s935_s27 = sphi %s1027_s27, %s1508_s27   ;;  %s931_s0 = sphi %s1025_s0, %s1517_s0   ;;  %s927_s26 = sphi %s1023_s26, %s1516_s26  }
  0x15   : > { %1454 = sst [smem:[#allocation27_spill]] %s947_s29  ;;  %s47_s14 = sadd.s32 1, %s975_s11 }
  0x16   : > { %1455 = sst [smem:[#allocation28_spill]] %s959_s7  ;;  %p45_p0 = scmp.ge.s32.totalorder %s44_s13, 3 }
  0x17   : > { %1456 = sst [smem:[#allocation29_spill]] %s963_s8  ;;  %p94_p1 = scmp.ne.s32.totalorder %s959_s7, %s955_s6 }
  0x18   : > { %1457 = sst [smem:[#allocation30_spill]] %s967_s9  ;;  %s1525_s13 = smov (%p45_p0, %s44_s13), 0 }
  0x19   : > { %1458 = sst [smem:[#allocation31_spill]] %s975_s11  ;;  %s1527_s14 = smov (!%p45_p0, %s47_s14), %s975_s11 }
  0x1a   : > { %s1096_s15 = sld [smem:[#allocation4 + %s975_s11]]  ;;  %p1441_p2 = scmp.eq.s32.totalorder %s979_s12, 0 }
  0x1b   : > { %s73_s16 = sld [smem:[#allocation5 + %s975_s11]]  ;;  %p49_p3 = scmp.ge.s32.totalorder %s1527_s14, 4 }
  0x1c   : > { %1459 = sst [smem:[#allocation32_spill]] %s1525_s13  ;;  %p100_p4 = scmp.ne.s32.totalorder %s955_s6, %s951_s30 }
  0x1d   : > { %p1110_p5 = por %p1441_p2, %p94_p1  ;;  %s1529_s14 = smov (%p49_p3, %s1527_s14), 0 }
  0x1e   : > { %1461 = sst [smem:[#allocation33_spill]] %s1529_s14  ;;  %p1440_p6 = scmp.lt.s32.totalorder %s979_s12, 12 }
  0x1f   : > { %s78_s20 = sld [smem:[#allocation4 + %s1529_s14]]  ;;  %s202_s24 = sand.u32 1, %s959_s7  }
  0x20   : > { %s79_s21 = sld [smem:[#allocation5 + %s1529_s14]]  ;;  %s525_s17 = sshll.u32 %s202_s24, 3 }
  0x21   : > { %s518_s19 = sadd.s32 4294967295, %s73_s16  ;;  %p1128_p8 = pnand %p1440_p6, %p1110_p5 }
  0x22   : > { %p75_p7 = scmp.lt.s32.totalorder %s971_s10, %s518_s19  ;;  %s204_s9 = scalar_lea.vmem [#allocation9], %s525_s17 }
  0x23   : > { %s548_s5 = scalar_select %p1110_p5, [#allocation4], [#allocation13] }
  0x24   : > { %s76_s23 = scalar_select %p75_p7, %s971_s10, %s518_s19 }
  0x25   : > { %s1134_s19 = sshll.u32 %s204_s9, 4  ;;  %s1531_s5 = smov (!%p1440_p6, %s548_s5), [#allocation17] }
  0x26   : > { %s77_s25 = sadd.s32 %s76_s23, %s1096_s15  ;;  %s519_s8 = sadd.s32 4294967295, %s79_s21 }
  0x27   : > { %1463 = sst [smem:[#allocation34_spill]] %s1134_s19  ;;  %p81_p9 = scmp.lt.s32.totalorder %s1525_s13, %s519_s8 }
  0x28   : > { %s549_s15 = scalar_select %p1110_p5, %s975_s11, 0 }
  0x29   : > { %s82_s23 = scalar_select %p81_p9, %s1525_s13, %s519_s8 }
  0x2a   : > { %s1533_s15 = smov (!%p1440_p6, %s549_s15), 0  ;;  %s1464_s9 = sadd.s32 1, %s959_s7 }
  0x2b   : > { %s83_s24 = sadd.s32 %s82_s23, %s78_s20  ;;  %s205_s19 = sld [smem:[%s1531_s5 + %s1533_s15]] }
  0x2c   : > { %s84_s17 = ssub.s32 %s77_s25, %s83_s24  ;;  %s1156_s20 = sadd.s32 4294967295, %s979_s12  }
  0x2d   : > { %p85_p10 = scmp.eq.s32.totalorder %s84_s17, 0  ;;  %s517_s25 = sadd.s32 4294967294, %s979_s12  }
  0x2e   : > { %s550_s8 = scalar_select %p1110_p5, [#allocation5], [#allocation14] }
  0x2f   : > { %s1149_s21 = scalar_select %p85_p10, %s959_s7, %s1464_s9  }
  0x30   : > { %s1535_s8 = smov (!%p1440_p6, %s550_s8), [#allocation18]  ;;  %p1442_p11 = scmp.eq.s32.totalorder %s1156_s20, 0 }
  0x31   : > { %1465 = sst [smem:[#allocation35_spill]] %s1149_s21  ;;  %p138_p12 = scmp.ne.s32.totalorder %s943_s28, %s939_s1 }
  0x32   : > { %s206_s22 = sld [smem:[%s1535_s8 + %s1533_s15]]  ;;  %s148_s5 = ssub.s32 %s975_s11, %s1529_s14 }
  0x33   : > { %p1170_p0 = por %p1442_p11, %p100_p4  ;;  %p1176_p1 = por %p138_p12, %p1442_p11 }
  0x34   : > { %p1180_p3 = scmp.eq.s32.totalorder %s148_s5, 0  ;;  %p161_p5 = scmp.ne.s32.totalorder %s935_s27, %s931_s0 }
  0x35   : > { %s1467_s15 = scalar_select %p1176_p1, 1, 0 }
  0x36   : > { %p162_p7 = scmp.eq.s32.totalorder %s1156_s20, 11  ;;  %s1470_s3 = sld [smem:[#allocation41_spill]] }
  0x37   : > { %1468 = sst [smem:[#allocation36_spill]] %s1467_s15  ;;  %p1198_p10 = scmp.eq.s32.totalorder %s517_s25, 11 }
  0x38   : > { %s526_s23 = sadd.s32 4294967295, %s206_s22  ;;  %s151_s22 = sadd.s32 1, %s935_s27 }
  0x39   : > { %p208_p13 = scmp.lt.s32.totalorder %s971_s10, %s526_s23  ;;  %p1194_p9 = por %p162_p7, %p161_p5 }
  0x3a   : > { %p737_p6 = pneg %p1128_p8 }
  0x3b   : > { %s209_s1 = scalar_select %p208_p13, %s971_s10, %s526_s23 }
  0x3c   : > { %s1471_s7 = scalar_select %p1194_p9, 1, 0 }
  0x3d   : > { %s210_s30 = sadd.s32 %s209_s1, %s205_s19  ;;  %s1474_s23 = sand.u32 1, %s979_s12  }
  0x3e   : > { %s527_s17 = sshll.u32 %s210_s30, 3  ;;  %1472 = sst [smem:[#allocation37_spill]] %s1471_s7 }
  0x3f   : > { %s214_s21 = scalar_lea.hbm %s1470_s3, %s527_s17  ;;  %s1205_s19 = scalar_lea.sflag [#allocation10], %s1474_s23 }
  0x40   : > { %s216_s5 = sshll.u32 %s214_s21, 4  ;;  %s740_s21 = scalar_lea.hbm %s1470_s3, 40  ;;  %s217_s5 = int_to_ptr.hbm [resolvable:$true] %s216_s5 }
  0x41   : > { %s733_s1 = sshra.s32 %s217_s5, 4  ;;  %s734_s1 = int_to_ptr.hbm [resolvable:$true] %s733_s1 }
  0x42   : > { %s735_s30 = scalar_lea.hbm %s734_s1, 8  ;;  %p741_p2 = scmp.lt.s32.totalorder %s734_s1, %s1470_s3 }
  0x43   : > { %p736_p13 = scmp.ne.s32.totalorder %s734_s1, %s735_s30  ;;  %p742_p11 = scmp.lt.s32.totalorder %s740_s21, %s735_s30 }
  0x45   : > { %p738_p5 = pnand %p737_p6, %p736_p13  ;;  %p743_p12 = por %p742_p11, %p741_p2 }
  0x47   : > { %p739_p7 = pneg %p738_p5 }
  0x49   : > { %p744_p4 = pnand %p743_p12, %p739_p7 }
  0x4b   : > { %747 = shalt.err (!%p744_p4)
}
  0x4c   : > { %s1475_s23 = sld [smem:[#allocation34_spill]]  ;;  %p1478_p2 = scmp.ne.s32.totalorder %s931_s0, %s927_s26 }
  0x4d   : > { %s1223_s1 = scalar_select %p1180_p3, %s935_s27, %s151_s22  }
  0x4e   : > { %p1230_p6 = por %p1198_p10, %p1478_p2  ;;  %p175_p11 = scmp.lt.s32.totalorder %s979_s12, 13 }
  0x4f   : > { %1477 = sst [smem:[#allocation38_spill]] %s1223_s1  ;;  %p1480_p4 = scmp.ge.s32.totalorder %s979_s12, 1 }
  0x50   : > { %s1482_s2 = sld [smem:[#allocation40_spill]]  ;;  %s983_s22 = smov [#allocation6]  }
  0x51   : > { %p1237_p12 = pnand %p1480_p4, %p175_p11  ;;  %p1483_p3 = scmp.eq.s32.totalorder %s1156_s20, 0 }
  0x52   : > { %s1476_s7 = int_to_ptr.vmem [resolvable:$true] %s1475_s23  ;;  %s111_s17 = sld [smem:[#allocation5 + %s975_s11]] }
  0x53   : > { %575 = dma.hbm_to_vmem [thread:$0]  (!%p1128_p8), %s217_s5, 128, %s1476_s7, %s1205_s19  }
  0x54   : > { %p564_p8 = pneg %p1237_p12  ;;  %s189_s5 = sshll.u32 %s983_s22, 4  ;;  %s190_s5 = int_to_ptr.vmem [resolvable:$true] %s189_s5 }
  0x55   : > { %s117_s9 = sld [smem:[#allocation5 + %s1529_s14]]  ;;  %p132_p13 = scmp.ne.s32.totalorder %s947_s29, %s943_s28 }
  0x56   : > { %s187_s15 = sshll.u32 %s1482_s2, 4  ;;  %p565_p10 = pnand %p564_p8, %p1483_p3  ;;  %s188_s15 = int_to_ptr.hbm [resolvable:$true] %s187_s15 }
  0x57   : > { %s110_s21 = sld [smem:[#allocation4 + %s975_s11]]  ;;  %p1484_p7 = scmp.eq.s32.totalorder %s979_s12, 0 }
  0x58   : > { %567 = dma.hbm_to_vmem [thread:$0]  (!%p565_p10), %s188_s15, 128, %s190_s5, [#allocation7]  }
  0x59   : > { %s520_s25 = sadd.s32 4294967295, %s111_s17  ;;  %s116_s8 = sld [smem:[#allocation4 + %s1529_s14]] }
  0x5a   : > { %p113_p5 = scmp.lt.s32.totalorder %s971_s10, %s520_s25  ;;  %p1258_p2 = por %p132_p13, %p1484_p7 }
  0x5b   : > { %s521_s7 = sadd.s32 4294967295, %s117_s9  ;;  %p1486_p4 = scmp.lt.s32.totalorder %s979_s12, 12 }
  0x5c   : > { %s114_s23 = scalar_select %p113_p5, %s971_s10, %s520_s25 }
  0x5d   : > { %p119_p11 = scmp.lt.s32.totalorder %s1525_s13, %s521_s7  ;;  %p1271_p8 = pnand %p1486_p4, %p1258_p2 }
  0x5e   : > { %s115_s15 = sadd.s32 %s114_s23, %s110_s21  ;;  %s125_s2 = sadd.s32 1, %s947_s29 }
  0x5f   : > { %s120_s22 = scalar_select %p119_p11, %s1525_s13, %s521_s7 }
  0x60   : > { %s554_s5 = scalar_select %p1258_p2, %s975_s11, 0 }
  0x61   : > { %s121_s17 = sadd.s32 %s120_s22, %s116_s8  ;;  %p1489_p10 = pmov %p1486_p4 }
  0x62   : > { %s122_s25 = ssub.s32 %s115_s15, %s121_s17  ;;  %s227_s8 = sand.u32 1, %s947_s29  }
  0x63   : > { %p123_p3 = scmp.eq.s32.totalorder %s122_s25, 0  ;;  %s1537_s5 = smov (!%p1489_p10, %s554_s5), 0 }
  0x64   : > { %s553_s3 = scalar_select %p1258_p2, [#allocation4], [#allocation15] }
  0x65   : > { %s1279_s14 = scalar_select %p123_p3, %s947_s29, %s125_s2  }
  0x66   : > { %s555_s21 = scalar_select %p1258_p2, [#allocation5], [#allocation16] }
  0x67   : > { %1488 = sst [smem:[#allocation39_spill]] %s1279_s14  ;;  %p1490_p13 = pmov %p1486_p4 }
  0x68   : > { %p1491_p5 = pmov %p1486_p4  ;;  %s528_s7 = sshll.u32 %s227_s8, 7 }
  0x69   : > { %s1539_s21 = smov (!%p1490_p13, %s555_s21), [#allocation20]  ;;  %s229_s17 = scalar_lea.vmem [#allocation11], %s528_s7 }
  0x6a   : > { %s1541_s3 = smov (!%p1491_p5, %s553_s3), [#allocation19]  ;;  %s231_s23 = sld [smem:[%s1539_s21 + %s1537_s5]] }
  0x6b   : > { %s230_s22 = sld [smem:[%s1541_s3 + %s1537_s5]]  ;;  %s243_s25 = sshll.u32 %s229_s17, 4  ;;  %s244_s25 = int_to_ptr.vmem [resolvable:$true] %s243_s25 }
  0x6c   : > { %p797_p11 = pneg %p1271_p8 }
  0x70   : > { %s529_s15 = sadd.s32 4294967295, %s231_s23 }
  0x71   : > { %p233_p7 = scmp.lt.s32.totalorder %s971_s10, %s529_s15 }
  0x73   : > { %s234_s13 = scalar_select %p233_p7, %s971_s10, %s529_s15 }
  0x75   : > { %s235_s2 = sadd.s32 %s234_s13, %s230_s22  ;;  %s800_s13 = scalar_lea.hbm %s1432_s4, 640 }
  0x76   : > { %s545_s11 = sshll.u32 %s235_s2, 7 }
  0x77   : > { %s240_s29 = scalar_lea.hbm %s1432_s4, %s545_s11 }
  0x78   : > { %s241_s1 = sshll.u32 %s240_s29, 4  ;;  %s242_s1 = int_to_ptr.hbm [resolvable:$true] %s241_s1 }
  0x79   : > { %s793_s27 = sshra.s32 %s242_s1, 4  ;;  %s794_s27 = int_to_ptr.hbm [resolvable:$true] %s793_s27 }
  0x7a   : > { %s795_s21 = scalar_lea.hbm %s794_s27, 128  ;;  %p801_p10 = scmp.lt.s32.totalorder %s794_s27, %s1432_s4 }
  0x7b   : > { %p796_p2 = scmp.ne.s32.totalorder %s794_s27, %s795_s21  ;;  %p802_p13 = scmp.lt.s32.totalorder %s800_s13, %s795_s21 }
  0x7d   : > { %p798_p4 = pnand %p797_p11, %p796_p2  ;;  %p803_p5 = por %p802_p13, %p801_p10 }
  0x7f   : > { %p799_p3 = pneg %p798_p4 }
  0x81   : > { %p804_p7 = pnand %p803_p5, %p799_p3 }
  0x83   : > { %807 = shalt.err (!%p804_p7)
}
  0x84   : > { %s984_s29 = smov 128   ;;  %s985_s11 = smov 8  }
  0x85   : > { %582 = dma.hbm_to_vmem [thread:$0]  (!%p1271_p8), %s242_s1, 2048, %s244_s25, %s1205_s19, %s984_s29, %s984_s29, %s985_s11  }
  0x86   : > { %255 = sbr.rel (%p1237_p12) target bundleno = 404 (0x194), region = 32  ;;  %p1492_p2 = scmp.eq.s32.totalorder (!%p1237_p12), %s1156_s20, 0 }
  0x8b   : > { %910 = dma.done.wait (%p1492_p2), [#allocation7], 128   ;;  %p1493_p11 = pmov %p1492_p2 }
  0x8c   : > { %s262_s27 = sand.u32 1, %s1156_s20   ;;  %s264_s14 = sand.u32 1, %s955_s6  }
  0x8d   : > { %912 = vsyncadd (%p1493_p11), [#allocation7], 4294967168  ;;  %s1314_s7 = sshll.u32 %s264_s14, 3  ;;  %s263_s22 = scalar_lea.sflag [#allocation10], %s262_s27 }
  0x8e   : > { %s266_s9 = scalar_lea.vmem [#allocation9], %s1314_s7 }
  0x8f   : > { %914 = dma.done.wait (%p1170_p0), %s263_s22, 128  }
  0x90   : > { %916 = vsyncadd (%p1170_p0), %s263_s22, 4294967168  ;;  %s274_s1 = sand.u32 1, %s943_s28  }
  0x91   : > { %s535_s30 = sshll.u32 %s274_s1, 7 }
  0x92   : > { %s1322_s15 = scalar_lea.vmem [#allocation11], %s535_s30 }
  0x93   : > { %918 = dma.done.wait (%p1176_p1), %s263_s22, 2048  }
  0x94   : > { %920 = vsyncadd (%p1176_p1), %s263_s22, 4294965248  ;;  %s1495_s20 = sld [smem:[#allocation30_spill]]  ;;  %s302_s25 = sand.u32 1, %s931_s0  }
  0x95   : > { %s1496_s17 = sld [smem:[#allocation29_spill]]  ;;  %s536_s18 = sshll.u32 %s302_s25, 3 }
  0x96   : > { %s1333_s2 = scalar_lea.vmem [#allocation12], %s536_s18 }
  0x9a   : > { %p318_p12 = scmp.eq.s32.totalorder %s1495_s20, 0 }
  0x9b   : > { %p319_p0 = scmp.eq.s32.totalorder %s1496_s17, 2 }
  0x9d   : > { %p320_p8 = pnand %p319_p0, %p318_p12 }
  0x9f   : > { %323 = sbr.rel (%p320_p8) target bundleno = 166 (0xa6), region = 48 }
  0xa4   : > { %v324_v0 = vld [vmem:[#allocation6] sm:$0xff] }
  0xa5   : > { %325 = vst [vmem:[%s1333_s2] sm:$0xff] %v324_v0 }
  0xa6 PF: > { %s1497_s24 = sld [smem:[#allocation30_spill]] }
  0xac   : > { %p537_p4 = scmp.le.s32.totalorder %s1497_s24, 0 }
  0xad   : > { %s1498_s21 = sld [smem:[#allocation29_spill]] (!%p537_p4) }
  0xae   : > { %329 = sbr.rel (%p537_p4) target bundleno = 383 (0x17f), region = 52 }
  0xb3   : > { %p538_p1 = scmp.ne.s32.totalorder %s1498_s21, 0 }
  0xb5   : > { %333 = sbr.rel (%p538_p1) target bundleno = 188 (0xbc), region = 56 }
  0xba   : > { %v986_v1 = vmov 0.0  }
  0xbb   : > { %334 = vst [vmem:[#allocation2] sm:$0xff] %v986_v1 }
  0xbc PF: > { %s1499_s3 = sld [smem:[#allocation30_spill]] }
  0xbd   : > { %s1500_s13 = sld [smem:[#allocation29_spill]] }
  0xc2   : > { %s335_s5 = sld [smem:[#allocation5 + %s1499_s3]] }
  0xc8   : > { %p539_p3 = scmp.ge.s32.totalorder %s1500_s13, %s335_s5 }
  0xca   : > { %339 = sbr.rel (%p539_p3) target bundleno = 368 (0x170), region = 60 }
  0xcf   : > { %v357_v2 = vld [vmem:[%s1322_s15 + $0x78] sm:$0xff]  ;;  %v356_v3 = vld [vmem:[%s1322_s15 + $0x70] sm:$0xff]  ;;  %v355_v4 = vld [vmem:[%s1322_s15 + $0x68] sm:$0xff] }
  0xd0   : > { %358 = vmatpush.msra.mxu0 %v357_v2  ;;  %v354_v5 = vld [vmem:[%s1322_s15 + $0x60] sm:$0xff]  ;;  %v353_v6 = vld [vmem:[%s1322_s15 + $0x58] sm:$0xff]  ;;  %v352_v7 = vld [vmem:[%s1322_s15 + $0x50] sm:$0xff] }
  0xd1   : > { %v351_v8 = vld [vmem:[%s1322_s15 + $0x48] sm:$0xff]  ;;  %v350_v9 = vld [vmem:[%s1322_s15 + $0x40] sm:$0xff]  ;;  %v349_v10 = vld [vmem:[%s1322_s15 + $0x38] sm:$0xff] }
  0xd2   : > { %359 = vmatpush.msra.mxu0 %v356_v3  ;;  %v348_v11 = vld [vmem:[%s1322_s15 + $0x30] sm:$0xff]  ;;  %v347_v12 = vld [vmem:[%s1322_s15 + $0x28] sm:$0xff]  ;;  %v346_v13 = vld [vmem:[%s1322_s15 + $0x20] sm:$0xff] }
  0xd3   : > { %v345_v14 = vld [vmem:[%s1322_s15 + $0x18] sm:$0xff]  ;;  %v344_v15 = vld [vmem:[%s1322_s15 + $0x10] sm:$0xff]  ;;  %v343_v16 = vld [vmem:[%s1322_s15 + $0x8] sm:$0xff] }
  0xd4   : > { %360 = vmatpush.msra.mxu0 %v355_v4  ;;  %v342_v17 = vld [vmem:[%s1322_s15] sm:$0xff]  ;;  %v341_v18 = vld [vmem:[%s266_s9] sm:$0xff] }
  0xd5   : > { %v340_v19 = vld [vmem:[#allocation2] sm:$0xff] }
  0xd6   : > { %361 = vmatpush.msra.mxu0 %v354_v5 }
  0xd8   : > { %362 = vmatpush.msra.mxu0 %v353_v6 }
  0xda   : > { %363 = vmatpush.msra.mxu0 %v352_v7 }
  0xdc   : > { %364 = vmatpush.msra.mxu0 %v351_v8 }
  0xde   : > { %365 = vmatpush.msra.mxu0 %v350_v9 }
  0xe0   : > { %366 = vmatpush.msra.mxu0 %v349_v10 }
  0xe2   : > { %367 = vmatpush.msra.mxu0 %v348_v11 }
  0xe4   : > { %368 = vmatpush.msra.mxu0 %v347_v12 }
  0xe6   : > { %369 = vmatpush.msra.mxu0 %v346_v13 }
  0xe8   : > { %370 = vmatpush.msra.mxu0 %v345_v14 }
  0xea   : > { %371 = vmatpush.msra.mxu0 %v344_v15 }
  0xec   : > { %372 = vmatpush.msra.mxu0 %v343_v16 }
  0xee   : > { %373 = vmatpush.msra.mxu0 %v342_v17 }
  0xef   : > { %374 = vmatmul.f32.vlgmr.msra.gmra.mxu0 %v341_v18 }
 0x16c   : > { %v375_v20 = vpop.f32.mrf.mxu0 }
 0x16d   : > { %v378_v21 = vadd.f32 %v375_v20, %v340_v19 }
 0x16f   : > { %379 = vst [vmem:[#allocation2] sm:$0xff] %v378_v21 }
 0x170 PF: > { %s1501_s8 = sld [smem:[#allocation29_spill]] }
 0x176   : > { %p540_p10 = scmp.ne.s32.totalorder %s1501_s8, 2 }
 0x178   : > { %382 = sbr.rel (%p540_p10) target bundleno = 383 (0x17f), region = 64 }
 0x17d   : > { %v383_v22 = vld [vmem:[#allocation2] sm:$0xff] }
 0x17e   : > { %384 = vst [vmem:[%s1333_s2] sm:$0xff] %v383_v22 }
 0x17f PF: > { %s1502_s23 = sld [smem:[#allocation30_spill]]  ;;  %s398_s19 = sshll.u32 %s1333_s2, 4  ;;  %s399_s19 = int_to_ptr.vmem [resolvable:$true] %s398_s19 }
 0x180   : > { %s1504_s7 = sld [smem:[#allocation42_spill]]  ;;  %s386_s30 = scalar_lea.sflag [#allocation8], %s302_s25 }
 0x185   : > { %s542_s11 = sshll.u32 %s1502_s23, 3 }
 0x186   : > { %s1505_s22 = smov %s1504_s7  ;;  %s396_s9 = scalar_lea.hbm %s1504_s7, %s542_s11 }
 0x187   : > { %s400_s1 = sshll.u32 %s396_s9, 4  ;;  %s843_s24 = scalar_lea.hbm %s1505_s22, 32  ;;  %s401_s1 = int_to_ptr.hbm [resolvable:$true] %s400_s1 }
 0x188   : > { %s837_s15 = sshra.s32 %s401_s1, 4  ;;  %s838_s15 = int_to_ptr.hbm [resolvable:$true] %s837_s15 }
 0x189   : > { %s839_s20 = scalar_lea.hbm %s838_s15, 8  ;;  %p844_p2 = scmp.lt.s32.totalorder %s838_s15, %s1505_s22 }
 0x18a   : > { %p840_p13 = scmp.ne.s32.totalorder %s838_s15, %s839_s20  ;;  %p845_p11 = scmp.lt.s32.totalorder %s843_s24, %s839_s20 }
 0x18c   : > { %p841_p5 = pnand %p840_p13, %p1194_p9  ;;  %p846_p12 = por %p845_p11, %p844_p2 }
 0x18e   : > { %p842_p7 = pneg %p841_p5 }
 0x190   : > { %p847_p0 = pnand %p846_p12, %p842_p7 }
 0x192   : > { %850 = shalt.err (!%p847_p0)
}
 0x193   : > { %562 = dma.vmem_to_hbm [thread:$0]  (%p1194_p9), %s399_s19, 128, %s401_s1, %s386_s30  }
 0x194 PF: > { %p590_p8 = scmp.ge.s32.totalorder %s979_s12, 2  ;;  %s412_s25 = sand.u32 1, %s927_s26  }
 0x195   : > { %s413_s2 = scalar_lea.sflag [#allocation8], %s412_s25 }
 0x196   : > { %p584_p4 = pnand %p590_p8, %p1230_p6 }
 0x198   : > { %p585_p1 = pneg %p584_p4 }
 0x19a   : > { %922 = dma.done.wait (%p585_p1), %s413_s2, 128  }
 0x19b   : > { %924 = vsyncadd (%p585_p1), %s413_s2, 4294967168  ;;  %s35_s12 = sadd.s32 1, %s979_s12   ;;  %s1507_s13 = sld [smem:[#allocation26_spill]] }
 0x19c   : > { %p1382_p3 = scmp.ge.s32.totalorder %s35_s12, 14   ;;  %s1508_s27 = sld [smem:[#allocation38_spill]] }
 0x19d   : > { %s1509_s8 = sld [smem:[#allocation27_spill]]  ;;  %s1516_s26 = smov %s931_s0 }
 0x19e   : > { %s1510_s29 = sld [smem:[#allocation39_spill]]  ;;  %s1518_s1 = smov %s943_s28 }
 0x19f   : > { %s1511_s23 = sld [smem:[#allocation28_spill]]  ;;  %s1520_s30 = smov %s955_s6 }
 0x1a0   : > { %s1512_s7 = sld [smem:[#allocation35_spill]] }
 0x1a1   : > { %s1513_s9 = sld [smem:[#allocation31_spill]]  ;;  %s1517_s0 = smov %s1507_s13 }
 0x1a2   : > { %s1514_s16 = sld [smem:[#allocation32_spill]] }
 0x1a3   : > { %s1515_s11 = sld [smem:[#allocation33_spill]]  ;;  %s1519_s28 = smov %s1509_s8 }
 0x1a4   : > { %s1522_s8 = smov %s971_s10  ;;  %34 = sbr.rel (!%p1382_p3) target bundleno = 20 (0x14), region = 113 }
 0x1a5   : > { %s1521_s6 = smov %s1511_s23 }
 0x1a8   : > { %s1523_s10 = smov %s1514_s16 }
 0x1a9   :  { %419 = vsyncpa [#allocation7], 1 }
 0x1aa   :  { %421 = vsyncpa [#allocation7 + $0x1], 1 }
 0x1ab   :  { %422 = vsyncpa [#allocation10], 1 }
 0x1ac   :  { %424 = vsyncpa [#allocation10 + $0x1], 1 }
 0x1ad   :  { %425 = vsyncpa [#allocation8], 1 }
 0x1ae   :  { %427 = vsyncpa [#allocation8 + $0x1], 1 }

</bundles_post_ra>
